<compile_context>
chip_gen: v6e
topology: v6e:2x2x1
jax: 0.10.0
libtpu: 0.0.40
codegen_flags: <defaults>
</compile_context>

<pallas_src>
import math
import functools

import jax
import jax.numpy as jnp
from jax.experimental import pallas as pl
from jax.experimental.pallas import tpu as pltpu


# ----------------------------------------------------------------------------
# Gabor filter-bank construction (parameter -> filter glue, plain JAX)
# ----------------------------------------------------------------------------
def gabor_bank(kernel_size, channel_out, sigma, theta, Lambda, psi, gamma):
    """Per-output-channel Gabor filters, shape (C_out, k, k) float32.

    Identical to the PyTorch gabor_fn up to the channel_in broadcast (PyTorch
    repeats this same filter across every input channel).
    """
    sigma_x = sigma
    sigma_y = sigma / gamma
    xmax = kernel_size // 2
    coords = jnp.arange(-xmax, xmax + 1, dtype=jnp.float32)
    # PyTorch: x varies along rows (dim -2), y varies along cols (dim -1).
    x = coords.reshape(-1, 1)
    y = coords.reshape(1, -1)

    def r(v):  # (C_out,) -> (C_out, 1, 1)
        return v.reshape(-1, 1, 1)

    cos_t, sin_t = jnp.cos(r(theta)), jnp.sin(r(theta))
    x_theta = x * cos_t + y * sin_t
    y_theta = -x * sin_t + y * cos_t
    gb = jnp.exp(
        -0.5 * (x_theta ** 2 / r(sigma_x) ** 2 + y_theta ** 2 / r(sigma_y) ** 2)
    ) * jnp.cos(2.0 * math.pi / r(Lambda) * x_theta + r(psi))
    return gb.astype(jnp.float32)


def gabor_fn(kernel_size, channel_in, channel_out, sigma, theta, Lambda, psi, gamma):
    """Full (C_out, C_in, k, k) bank, mirroring the PyTorch gabor_fn exactly."""
    gb = gabor_bank(kernel_size, channel_out, sigma, theta, Lambda, psi, gamma)
    return jnp.broadcast_to(
        gb[:, None], (channel_out, channel_in, kernel_size, kernel_size)
    ).astype(jnp.float32)


def _toeplitz_weights(gbank, Wp, OW, stride):
    """Expand (Cout, K, K) filters into a dense slab G of shape (K, Wp, Cout*OW).

    G[kh, w, o*OW + c] = g[o, kh, w - c*stride]  if 0 <= w - c*stride < K else 0
    so that  x_pad[r*stride + kh, :] @ G[kh]  yields, in one MXU pass, all kw
    taps of output row r for every (output-channel, output-column) pair.
    """
    Cout, K, _ = gbank.shape
    w_idx = jnp.arange(Wp)[:, None]              # (Wp, 1) input column
    c0 = jnp.arange(OW)[None, :] * stride        # (1, OW) output column start
    diff = w_idx - c0                            # (Wp, OW) candidate kw index
    valid = (diff >= 0) & (diff < K)
    kw = jnp.clip(diff, 0, K - 1)
    gT = jnp.transpose(gbank, (1, 0, 2))         # (K, Cout, K)
    G = gT[:, :, kw]                             # (K, Cout, Wp, OW)
    G = jnp.transpose(G, (0, 2, 1, 3))           # (K, Wp, Cout, OW)
    G = jnp.where(valid[None, :, None, :], G, 0.0)
    return G.reshape(K, Wp, Cout * OW).astype(jnp.float32)


# ----------------------------------------------------------------------------
# Pallas conv2d kernel (the hot path)
# ----------------------------------------------------------------------------
def gabor_conv2d_pallas(x_nchw, gbank, stride=1, padding=0, batch_block=None):
    """F.conv2d(x, broadcast(gbank over C_in), stride, padding) — NCHW in/out."""
    N, Cin, H, W = x_nchw.shape
    Cout, K, K2 = gbank.shape
    assert K == K2

    Hp, Wp = H + 2 * padding, W + 2 * padding
    OH = (Hp - K) // stride + 1
    OW = (Wp - K) // stride + 1
    COW = Cout * OW  # lane dim of the accumulator / output stores (128 here)

    # The Gabor filter is the same for every input channel, so summing the input
    # over channel_in first is exact and shrinks everything downstream by Cin.
    xs = jnp.sum(x_nchw.astype(jnp.float32), axis=1)                     # (N, H, W)
    xs = jnp.pad(xs, ((0, 0), (padding, padding), (padding, padding)))   # (N, Hp, Wp)

    G = _toeplitz_weights(gbank, Wp, OW, stride)                         # (K, Wp, COW)

    NB = N if batch_block is None else batch_block                       # whole batch/step
    assert N % NB == 0

    def kernel(x_ref, g_ref, o_ref):
        # x_ref: (NB, Hp, Wp)   g_ref: (K, Wp, COW)   o_ref: (NB, OH, COW)
        for n in range(NB):                      # tiny static batch, unrolled
            xv = x_ref[n]                        # (Hp, Wp), W on lanes
            acc = jnp.zeros((OH, COW), jnp.float32)   # dense accumulator
            for kh in range(K):                  # K accumulated MXU matmuls
                rows = xv[kh:kh + (OH - 1) * stride + 1:stride, :]   # (OH, Wp)
                acc = acc + jnp.dot(rows, g_ref[kh],
                                    preferred_element_type=jnp.float32)
            o_ref[n] = acc                       # unmasked lane-dense store

    out = pl.pallas_call(
        kernel,
        out_shape=jax.ShapeDtypeStruct((N, OH, COW), jnp.float32),
        grid_spec=pltpu.PrefetchScalarGridSpec(
            num_scalar_prefetch=0,
            grid=(N // NB,),                     # = (1,) for this demo
            in_specs=[
                pl.BlockSpec((NB, Hp, Wp), lambda b: (b, 0, 0)),
                pl.BlockSpec((K, Wp, COW), lambda b: (0, 0, 0)),
            ],
            out_specs=pl.BlockSpec((NB, OH, COW), lambda b: (b, 0, 0)),
        ),
        compiler_params=pltpu.CompilerParams(
            dimension_semantics=("parallel",)),  # batch axis shards across TCs on v7x
    )(xs, G)

    # (N, OH, Cout, OW) -> (N, Cout, OH, OW): trivial axis swap of an already
    # lane-dense 16 KiB result; the heavy data movement stayed inside the kernel.
    return jnp.transpose(out.reshape(N, OH, Cout, OW), (0, 2, 1, 3))


# ----------------------------------------------------------------------------
# GaborConv2d forward
# ----------------------------------------------------------------------------
def gabor_conv2d_forward(x_nchw, params, kernel_size, channel_in, channel_out,
                         stride=1, padding=0):
    assert x_nchw.shape[1] == channel_in
    theta = jax.nn.sigmoid(params["theta"]) * math.pi * 2.0
    gamma = 1.0 + params["gamma"] * 0.5
    sigma = 0.1 + jax.nn.sigmoid(params["sigma"]) * 0.4
    Lambda = 0.001 + jax.nn.sigmoid(params["Lambda"]) * 0.999
    psi = params["psi"]
    gbank = gabor_bank(kernel_size, channel_out, sigma, theta, Lambda, psi, gamma)
    return gabor_conv2d_pallas(x_nchw, gbank, stride=stride, padding=padding)


if __name__ == "__main__":
    channel_in, channel_out, kernel_size = 4, 8, 3
    stride, padding = 1, 1

    key = jax.random.PRNGKey(0)
    k1, k2, k3, k4, k5, kx = jax.random.split(key, 6)

    # Deterministic parameter init matching the module's __init__ distributions.
    params = {
        "Lambda": jax.random.uniform(k1, (channel_out,), dtype=jnp.float32),      # rand
        "theta": jax.random.normal(k2, (channel_out,), dtype=jnp.float32) * 1.0,  # randn
        "psi": jax.random.normal(k3, (channel_out,), dtype=jnp.float32) * 0.02,   # randn*0.02
        "sigma": jax.random.normal(k4, (channel_out,), dtype=jnp.float32) * 1.0,  # randn
        "gamma": jax.random.normal(k5, (channel_out,), dtype=jnp.float32) * 0.0,  # randn*0.0
    }

    x = jax.random.normal(kx, (2, channel_in, 16, 16), dtype=jnp.float32)

    fwd = jax.jit(functools.partial(
        gabor_conv2d_forward, kernel_size=kernel_size, channel_in=channel_in,
        channel_out=channel_out, stride=stride, padding=padding))
    out = jax.block_until_ready(fwd(x, params))

    # Cross-check against XLA's conv with the full Cin-broadcast Gabor bank.
    theta = jax.nn.sigmoid(params["theta"]) * math.pi * 2.0
    gamma = 1.0 + params["gamma"] * 0.5
    sigma = 0.1 + jax.nn.sigmoid(params["sigma"]) * 0.4
    Lambda = 0.001 + jax.nn.sigmoid(params["Lambda"]) * 0.999
    kern = gabor_fn(kernel_size, channel_in, channel_out,
                    sigma, theta, Lambda, params["psi"], gamma)
    ref = jax.lax.conv_general_dilated(
        x, kern, window_strides=(stride, stride),
        padding=((padding, padding), (padding, padding)),
        dimension_numbers=("NCHW", "OIHW", "NCHW"))

    assert out.shape == ref.shape == (2, channel_out, 16, 16)
    err = float(jnp.max(jnp.abs(out - ref)))
    assert err < 5e-4, f"mismatch vs XLA conv reference: max_abs_err={err}"

    print("KERNEL_OK")
</pallas_src>

<mosaic_0001>
module attributes {stable_mosaic.version = 11 : i64} {
  func.func @kernel(%arg0: i32, %arg1: memref<2x18x18xf32, #tpu.memory_space<vmem>>, %arg2: memref<3x18x128xf32, #tpu.memory_space<vmem>>, %arg3: memref<2x16x128xf32, #tpu.memory_space<vmem>>) attributes {dimension_semantics = [#tpu.dimension_semantics<parallel>], iteration_bounds = array<i64: 1>, scalar_prefetch = 0 : i64, scratch_operands = 0 : i64, tpu.core_type = #tpu.core_type<tc>, window_params = [{transform_indices = @transform_0, window_bounds = array<i64: 2, 18, 18>}, {pipeline_mode = #tpu.pipeline_mode<synchronous>, transform_indices = @transform_1, window_bounds = array<i64: 3, 18, 128>}, {transform_indices = @transform_2, window_bounds = array<i64: 2, 16, 128>}]} {
    %c0 = arith.constant 0 : index
    %c0_0 = arith.constant 0 : index
    %c0_1 = arith.constant 0 : index
    %0 = vector.load %arg1[%c0, %c0_0, %c0_1] : memref<2x18x18xf32, #tpu.memory_space<vmem>>, vector<1x18x18xf32>
    %1 = vector.shape_cast %0 : vector<1x18x18xf32> to vector<18x18xf32>
    %cst = arith.constant 0.000000e+00 : f32
    %2 = vector.broadcast %cst : f32 to vector<16x128xf32>
    %3 = vector.extract_strided_slice %1 {offsets = [0, 0], sizes = [16, 18], strides = [1, 1]} : vector<18x18xf32> to vector<16x18xf32>
    %c0_2 = arith.constant 0 : index
    %c0_3 = arith.constant 0 : index
    %c0_4 = arith.constant 0 : index
    %4 = vector.load %arg2[%c0_2, %c0_3, %c0_4] : memref<3x18x128xf32, #tpu.memory_space<vmem>>, vector<1x18x128xf32>
    %5 = vector.shape_cast %4 : vector<1x18x128xf32> to vector<18x128xf32>
    %cst_5 = arith.constant dense<0.000000e+00> : vector<16x128xf32>
    %6 = tpu.matmul %3, %5, %cst_5 {dimension_numbers = #tpu.dot_dimension_numbers<[1], [0], [0], [1], [0, 0, 1, 1], [], []>} : vector<16x18xf32>, vector<18x128xf32>, vector<16x128xf32> -> vector<16x128xf32>
    %7 = arith.addf %2, %6 : vector<16x128xf32>
    %8 = vector.extract_strided_slice %1 {offsets = [1, 0], sizes = [16, 18], strides = [1, 1]} : vector<18x18xf32> to vector<16x18xf32>
    %c1 = arith.constant 1 : index
    %c0_6 = arith.constant 0 : index
    %c0_7 = arith.constant 0 : index
    %9 = vector.load %arg2[%c1, %c0_6, %c0_7] : memref<3x18x128xf32, #tpu.memory_space<vmem>>, vector<1x18x128xf32>
    %10 = vector.shape_cast %9 : vector<1x18x128xf32> to vector<18x128xf32>
    %cst_8 = arith.constant dense<0.000000e+00> : vector<16x128xf32>
    %11 = tpu.matmul %8, %10, %cst_8 {dimension_numbers = #tpu.dot_dimension_numbers<[1], [0], [0], [1], [0, 0, 1, 1], [], []>} : vector<16x18xf32>, vector<18x128xf32>, vector<16x128xf32> -> vector<16x128xf32>
    %12 = arith.addf %7, %11 : vector<16x128xf32>
    %13 = vector.extract_strided_slice %1 {offsets = [2, 0], sizes = [16, 18], strides = [1, 1]} : vector<18x18xf32> to vector<16x18xf32>
    %c2 = arith.constant 2 : index
    %c0_9 = arith.constant 0 : index
    %c0_10 = arith.constant 0 : index
    %14 = vector.load %arg2[%c2, %c0_9, %c0_10] : memref<3x18x128xf32, #tpu.memory_space<vmem>>, vector<1x18x128xf32>
    %15 = vector.shape_cast %14 : vector<1x18x128xf32> to vector<18x128xf32>
    %cst_11 = arith.constant dense<0.000000e+00> : vector<16x128xf32>
    %16 = tpu.matmul %13, %15, %cst_11 {dimension_numbers = #tpu.dot_dimension_numbers<[1], [0], [0], [1], [0, 0, 1, 1], [], []>} : vector<16x18xf32>, vector<18x128xf32>, vector<16x128xf32> -> vector<16x128xf32>
    %17 = arith.addf %12, %16 : vector<16x128xf32>
    %c0_12 = arith.constant 0 : index
    %c0_13 = arith.constant 0 : index
    %c0_14 = arith.constant 0 : index
    %18 = vector.load %arg3[%c0_12, %c0_13, %c0_14] : memref<2x16x128xf32, #tpu.memory_space<vmem>>, vector<1x16x128xf32>
    %19 = vector.shape_cast %18 : vector<1x16x128xf32> to vector<16x128xf32>
    %20 = vector.shape_cast %17 : vector<16x128xf32> to vector<1x16x128xf32>
    tpu.vector_store %arg3[%c0_12, %c0_13, %c0_14], %20 {strides = array<i32>} : memref<2x16x128xf32, #tpu.memory_space<vmem>>, vector<1x16x128xf32>,
    %c1_15 = arith.constant 1 : index
    %c0_16 = arith.constant 0 : index
    %c0_17 = arith.constant 0 : index
    %21 = vector.load %arg1[%c1_15, %c0_16, %c0_17] : memref<2x18x18xf32, #tpu.memory_space<vmem>>, vector<1x18x18xf32>
    %22 = vector.shape_cast %21 : vector<1x18x18xf32> to vector<18x18xf32>
    %cst_18 = arith.constant 0.000000e+00 : f32
    %23 = vector.broadcast %cst_18 : f32 to vector<16x128xf32>
    %24 = vector.extract_strided_slice %22 {offsets = [0, 0], sizes = [16, 18], strides = [1, 1]} : vector<18x18xf32> to vector<16x18xf32>
    %c0_19 = arith.constant 0 : index
    %c0_20 = arith.constant 0 : index
    %c0_21 = arith.constant 0 : index
    %25 = vector.load %arg2[%c0_19, %c0_20, %c0_21] : memref<3x18x128xf32, #tpu.memory_space<vmem>>, vector<1x18x128xf32>
    %26 = vector.shape_cast %25 : vector<1x18x128xf32> to vector<18x128xf32>
    %cst_22 = arith.constant dense<0.000000e+00> : vector<16x128xf32>
    %27 = tpu.matmul %24, %26, %cst_22 {dimension_numbers = #tpu.dot_dimension_numbers<[1], [0], [0], [1], [0, 0, 1, 1], [], []>} : vector<16x18xf32>, vector<18x128xf32>, vector<16x128xf32> -> vector<16x128xf32>
    %28 = arith.addf %23, %27 : vector<16x128xf32>
    %29 = vector.extract_strided_slice %22 {offsets = [1, 0], sizes = [16, 18], strides = [1, 1]} : vector<18x18xf32> to vector<16x18xf32>
    %c1_23 = arith.constant 1 : index
    %c0_24 = arith.constant 0 : index
    %c0_25 = arith.constant 0 : index
    %30 = vector.load %arg2[%c1_23, %c0_24, %c0_25] : memref<3x18x128xf32, #tpu.memory_space<vmem>>, vector<1x18x128xf32>
    %31 = vector.shape_cast %30 : vector<1x18x128xf32> to vector<18x128xf32>
    %cst_26 = arith.constant dense<0.000000e+00> : vector<16x128xf32>
    %32 = tpu.matmul %29, %31, %cst_26 {dimension_numbers = #tpu.dot_dimension_numbers<[1], [0], [0], [1], [0, 0, 1, 1], [], []>} : vector<16x18xf32>, vector<18x128xf32>, vector<16x128xf32> -> vector<16x128xf32>
    %33 = arith.addf %28, %32 : vector<16x128xf32>
    %34 = vector.extract_strided_slice %22 {offsets = [2, 0], sizes = [16, 18], strides = [1, 1]} : vector<18x18xf32> to vector<16x18xf32>
    %c2_27 = arith.constant 2 : index
    %c0_28 = arith.constant 0 : index
    %c0_29 = arith.constant 0 : index
    %35 = vector.load %arg2[%c2_27, %c0_28, %c0_29] : memref<3x18x128xf32, #tpu.memory_space<vmem>>, vector<1x18x128xf32>
    %36 = vector.shape_cast %35 : vector<1x18x128xf32> to vector<18x128xf32>
    %cst_30 = arith.constant dense<0.000000e+00> : vector<16x128xf32>
    %37 = tpu.matmul %34, %36, %cst_30 {dimension_numbers = #tpu.dot_dimension_numbers<[1], [0], [0], [1], [0, 0, 1, 1], [], []>} : vector<16x18xf32>, vector<18x128xf32>, vector<16x128xf32> -> vector<16x128xf32>
    %38 = arith.addf %33, %37 : vector<16x128xf32>
    %c1_31 = arith.constant 1 : index
    %c0_32 = arith.constant 0 : index
    %c0_33 = arith.constant 0 : index
    %39 = vector.load %arg3[%c1_31, %c0_32, %c0_33] : memref<2x16x128xf32, #tpu.memory_space<vmem>>, vector<1x16x128xf32>
    %40 = vector.shape_cast %39 : vector<1x16x128xf32> to vector<16x128xf32>
    %41 = vector.shape_cast %38 : vector<16x128xf32> to vector<1x16x128xf32>
    tpu.vector_store %arg3[%c1_31, %c0_32, %c0_33], %41 {strides = array<i32>} : memref<2x16x128xf32, #tpu.memory_space<vmem>>, vector<1x16x128xf32>,
    return
  }
  func.func @transform_0(%arg0: i32) -> (i32, i32, i32) {
    %c0_i32 = arith.constant 0 : i32
    %c0_i32_0 = arith.constant 0 : i32
    %c0_i32_1 = arith.constant 0 : i32
    return %arg0, %c0_i32, %c0_i32_0 : i32, i32, i32
  }
  func.func @transform_1(%arg0: i32) -> (i32, i32, i32) {
    %c0_i32 = arith.constant 0 : i32
    %c0_i32_0 = arith.constant 0 : i32
    %c0_i32_1 = arith.constant 0 : i32
    %c0_i32_2 = arith.constant 0 : i32
    return %c0_i32, %c0_i32_0, %c0_i32_1 : i32, i32, i32
  }
  func.func @transform_2(%arg0: i32) -> (i32, i32, i32) {
    %c0_i32 = arith.constant 0 : i32
    %c0_i32_0 = arith.constant 0 : i32
    %c0_i32_1 = arith.constant 0 : i32
    return %arg0, %c0_i32, %c0_i32_0 : i32, i32, i32
  }
}

</mosaic_0001>

<bundles_post_ra>
// kernel: cos.0
= control target key start
LH: loop header
LB: loop body
LE: loop exit
PB: predicated region body
PF: predicated region fallthrough
CT: control target
= control target key end

     0   :  { %v125_v12 = vmov 683565275   ;;  %v126_v14 = vmov 2475754826   ;;  %v127_v16 = vmov 2131351028   ;;  %s168_s0 = inlined_call_operand.vmem [shape: f32[8], index: 0, kind: input, shape index: {}]   ;;  %s169_s1 = inlined_call_operand.vmem [shape: f32[8], index: 1, kind: output, shape index: {}]  }
   0x1   :  { %v144_v0 = vld [vmem:[%s168_s0] sm:$0x1]  ;;  %v128_v18 = vmov 2102212464   ;;  %v129_v20 = vmov 920167782  }
   0x2   :  { %v6_v1 = vand.u32 2139095040, %v144_v0  ;;  %v3_v3 = vand.u32 2147483647, %v144_v0  ;;  %v130_v27 = vmov 1326507024   ;;  %vm5_vm7 = vcmp.lt.s32.totalorder %v144_v0, 0 }
   0x3   :  { %vm95_vm12 = vweird.f32 %v144_v0 }
   0x4   :  { %v7_v2 = vshrl.u32 %v6_v1, 23  ;;  %v10_v6 = vand.u32 8388607, %v3_v3  ;;  %vm4_vm8 = vcmp.le.f32.partialorder %v3_v3, 0.7853982 }
   0x6   :  { %v107_v4 = vadd.s32 4294967169, %v7_v2  ;;  %v11_v9 = vor.u32 8388608, %v10_v6 }
   0x8   :  { %v13_v5 = vadd.s32 1, %v107_v4  ;;  %v51_v29 = vshll.u32 %v11_v9, 8 }
   0xa   :  { %vm14_vm0 = vcmp.gt.s32.totalorder %v13_v5, 0 }
   0xb   :  { %v15_v7 = vsel %vm14_vm0, %v13_v5, 0 }
   0xc   :  { %v17_v8 = vand.u32 31, %v15_v7  ;;  %v16_v10 = vshrl.u32 %v15_v7, 5 }
   0xe   :  { %v18_v11 = vsub.s32 32, %v17_v8  ;;  %v20_v13 = vshll.u32 %v125_v12, %v17_v8  ;;  %v23_v15 = vshll.u32 %v126_v14, %v17_v8  ;;  %v26_v17 = vshll.u32 %v127_v16, %v17_v8 }
   0xf   :  { %v29_v19 = vshll.u32 %v128_v18, %v17_v8  ;;  %v32_v21 = vshll.u32 %v129_v20, %v17_v8  ;;  %vm35_vm1 = vcmp.lt.s32.totalorder %v16_v10, 1  ;;  %vm38_vm2 = vcmp.lt.s32.totalorder %v16_v10, 4 }
  0x10   :  { %v19_v22 = vshrl.u32 %v125_v12, %v18_v11  ;;  %v21_v23 = vshrl.u32 %v126_v14, %v18_v11  ;;  %v24_v24 = vshrl.u32 %v127_v16, %v18_v11  ;;  %v27_v25 = vshrl.u32 %v128_v18, %v18_v11 }
  0x11   :  { %v30_v26 = vshrl.u32 %v129_v20, %v18_v11  ;;  %v33_v28 = vshrl.u32 %v130_v27, %v18_v11  ;;  %vm36_vm3 = vcmp.lt.s32.totalorder %v16_v10, 2  ;;  %vm37_vm4 = vcmp.lt.s32.totalorder %v16_v10, 3 }
  0x12   :  { %v22_v30 = vor.u32 %v21_v23, %v20_v13  ;;  %v25_v31 = vor.u32 %v24_v24, %v23_v15  ;;  %v28_v32 = vor.u32 %v27_v25, %v26_v17 }
  0x13   :  { %v31_v33 = vor.u32 %v30_v26, %v29_v19  ;;  %v34_v34 = vor.u32 %v33_v28, %v32_v21 }
  0x14   :  { %v39_v35 = vsel %vm35_vm1, %v19_v22, %v22_v30  ;;  %v40_v36 = vsel %vm38_vm2, %v28_v32, 2102212464  ;;  %v43_v37 = vsel %vm35_vm1, %v22_v30, %v25_v31  ;;  %v47_v38 = vsel %vm35_vm1, %v25_v31, %v28_v32 }
  0x15   :  { %v41_v39 = vsel %vm37_vm4, %v25_v31, %v40_v36  ;;  %v44_v40 = vsel %vm38_vm2, %v31_v33, 920167782  ;;  %v48_v41 = vsel %vm38_vm2, %v34_v34, 1326507024 }
  0x16   :  { %v45_v42 = vsel %vm37_vm4, %v28_v32, %v44_v40  ;;  %v49_v43 = vsel %vm37_vm4, %v31_v33, %v48_v41  ;;  %v42_v44 = vsel %vm36_vm3, %v39_v35, %v41_v39 }
  0x17   :  { %v46_v45 = vsel %vm36_vm3, %v43_v37, %v45_v42  ;;  %v50_v46 = vsel %vm36_vm3, %v47_v38, %v49_v43  ;;  %v58_v51 = vmul.u32 %v51_v29, %v42_v44 }
  0x18   :  { %v150_v47 = vmul.u32.u64.low %v51_v29, %v50_v46  ;;  %v151_v48 = vmul.u32.u64.high %v51_v29, %v50_v46, %v150_v47  ;;  %v153_v49 = vmul.u32.u64.low %v51_v29, %v46_v45  ;;  %v154_v50 = vmul.u32.u64.high %v51_v29, %v46_v45, %v153_v49 }
  0x1a   :  { %vm60_vm5 = vc.u32 %v151_v48, %v153_v49  ;;  %v61_v52 = vadd.s32 1, %v154_v50  ;;  %v59_v63 = vadd.s32 %v153_v49, %v151_v48 }
  0x1c   :  { %v62_v53 = vsel %vm60_vm5, %v61_v52, %v154_v50 }
  0x1d   :  { %v63_v54 = vadd.s32 %v62_v53, %v58_v51 }
  0x1f   :  { %v64_v55 = vadd.s32 536870912, %v63_v54 }
  0x21   :  { %v65_v56 = vshrl.u32 %v64_v55, 30 }
  0x23   :  { %v66_v57 = vshll.u32 %v65_v56, 30  ;;  %v89_v15 = vsub.s32 4, %v65_v56 }
  0x25   :  { %v67_v58 = vsub.s32 %v63_v54, %v66_v57  ;;  %v90_v17 = vsel %vm5_vm7, %v89_v15, %v65_v56 }
  0x26   :  { %v92_v18 = vsel %vm4_vm8, 0, %v90_v17 }
  0x27   :  { %v69_v59 = vsub.s32 0, %v67_v58  ;;  %v96_v19 = vand.u32 3, %v92_v18 }
  0x29   :  { %v108_v60 = vmin.u32 %v69_v59, %v67_v58  ;;  %vm101_vm9 = vcmp.eq.s32.totalorder %v96_v19, 2  ;;  %vm98_vm10 = vcmp.eq.s32.totalorder %v96_v19, 0  ;;  %vm97_vm11 = vcmp.lt.s32.totalorder %v96_v19, 2 }
  0x2b   :  { %v71_v61 = vclz %v108_v60 }
  0x2d   :  { %v109_v62 = vadd.s32 4294967294, %v71_v61 }
  0x2f   :  { %vm110_vm6 = vcmp.lt.s32.totalorder %v109_v62, 0 }
  0x30   :  { %v74_v1 = vsel %vm110_vm6, 0, %v109_v62 }
  0x31   :  { %v75_v2 = vsub.s32 32, %v74_v1  ;;  %v76_v4 = vshll.u32 %v67_v58, %v74_v1  ;;  %v79_v5 = vsub.s32 4294967266, %v74_v1 }
  0x33   :  { %v77_v6 = vshrl.u32 %v59_v63, %v75_v2  ;;  %v80_v7 = vadd.s32 127, %v79_v5 }
  0x35   :  { %v78_v8 = vor.u32 %v77_v6, %v76_v4  ;;  %v81_v9 = vshll.u32 %v80_v7, 23 }
  0x37   :  { %v82_v10 = vor.u32 4788187, %v81_v9  ;;  %v85_v11 = vcvt.s32.f32 %v78_v8 }
  0x39   :  { %v83_v12 = vand.u32 2147483647, %v82_v10 }
  0x3b   :  { %v86_v13 = vmul.f32 %v85_v11, %v83_v12 }
  0x3d   :  { %v87_v3 = vxor.u32 2147483648, %v86_v13 }
  0x3f   :  { %v88_v14 = vsel %vm5_vm7, %v87_v3, %v86_v13 }
  0x40   :  { %v91_v16 = vsel %vm4_vm8, %v144_v0, %v88_v14 }
  0x41   :  { %121 = vcosq.f32 %v91_v16 }
  0x42   :  { %123 = vsinq.f32 %v91_v16 }
  0x4e   :  { %v122_v20 = vpop.eup %121 }
  0x4f   :  { %v124_v21 = vpop.eup %123  ;;  %v102_v22 = vxor.u32 2147483648, %v122_v20 }
  0x50   :  { %v99_v23 = vxor.u32 2147483648, %v124_v21 }
  0x51   :  { %v103_v0 = vsel %vm101_vm9, %v102_v22, %v124_v21 }
  0x52   :  { %v100_v24 = vsel %vm98_vm10, %v122_v20, %v99_v23 }
  0x53   :  { %v104_v25 = vsel %vm97_vm11, %v100_v24, %v103_v0 }
  0x54   :  { %v105_v26 = vsel %vm95_vm12, nan, %v104_v25 }
  0x55   :  { %106 = vst [vmem:[%s169_s1] sm:$0x1] %v105_v26 }

// kernel: gabor_conv2d_forward.1
= control target key start
LH: loop header
LB: loop body
LE: loop exit
PB: predicated region body
PF: predicated region fallthrough
CT: control target
= control target key end

     0   :  { %vm35_vm0 = vcmask 1041408   ;;  %vm24_vm1 = vcmask 1046528   ;;  %vm30_vm2 = vcmask 146432   ;;  %vm200_vm3 = vcmask 1045504   ;;  %s817_s1 = inlined_call_operand.vmem [shape: f32[3,18,128], index: 1, kind: input, shape index: {}]   ;;  %s818_s0 = inlined_call_operand.vmem [shape: f32[2,18,18], index: 0, kind: input, shape index: {}]   ;;  %s819_s2 = inlined_call_operand.vmem [shape: f32[2,16,128], index: 2, kind: output, shape index: {}]  }
   0x1   :  { %v575_v0 = vld [vmem:[%s817_s1 + $0x28] sm:$0x3]  ;;  %v16_v1 = vld [vmem:[%s817_s1 + $0x10] sm:$0x3]  ;;  %v574_v2 = vld [vmem:[%s817_s1 + $0x20] sm:$0xff] }
   0x2   :  { %638 = vmatprep.subr.msk.mxu0 %vm35_vm0, %v575_v0  ;;  %647 = vmatprep.subr.msk.mxu1 %vm35_vm0, %v16_v1  ;;  %v721_v3 = vld [vmem:[%s817_s1 + $0x8] sm:$0xff]  ;;  %v573_v4 = vld [vmem:[%s817_s1 + $0x18] sm:$0xff]  ;;  %v729_v5 = vld [vmem:[%s817_s1] sm:$0xff] }
   0x3   :  { %639 = vmatpush3.msk.msra.mxu0 %vm35_vm0, %v575_v0  ;;  %648 = vmatpush3.msk.msra.mxu1 %vm35_vm0, %v16_v1  ;;  %v11_v6 = vld [vmem:[%s818_s0] sm:$0xff]  ;;  %v12_v7 = vld [vmem:[%s818_s0 + $0x8] sm:$0xff]  ;;  %v13_v8 = vld [vmem:[%s818_s0 + $0x10] sm:$0x3] }
   0x4   :  { %640 = vmatprep.subr.mxu0 %v574_v2  ;;  %649 = vmatprep.subr.mxu1 %v721_v3  ;;  %v25_v9 = vrot.slane %v11_v6, 1  ;;  %v26_v10 = vrot.slane %v12_v7, 1  ;;  %v28_v11 = vrot.slane %v13_v8, 1  ;;  %v584_v14 = vld [vmem:[%s817_s1 + $0x40] sm:$0x3]  ;;  %v588_v16 = vld [vmem:[%s818_s0 + $0x18] sm:$0xff] }
   0x5   :  { %641 = vmatpush3.msra.mxu0 %v574_v2  ;;  %650 = vmatpush3.msra.mxu1 %v721_v3  ;;  %v593_v15 = vld [vmem:[%s817_s1 + $0x28] sm:$0x3]  ;;  %v589_v17 = vld [vmem:[%s818_s0 + $0x20] sm:$0xff]  ;;  %v201_v18 = vrot.slane %v11_v6, 2  ;;  %v202_v19 = vrot.slane %v12_v7, 2  ;;  %v204_v21 = vrot.slane %v13_v8, 2 }
   0x6   :  { %642 = vmatprep.subr.mxu0 %v573_v4  ;;  %651 = vmatprep.subr.mxu1 %v729_v5  ;;  %v27_v12 = vsel %vm24_vm1, %v25_v9, %v26_v10  ;;  %v29_v13 = vsel %vm24_vm1, %v26_v10, %v28_v11  ;;  %v590_v20 = vld [vmem:[%s818_s0 + $0x28] sm:$0x3]  ;;  %v583_v22 = vld [vmem:[%s817_s1 + $0x38] sm:$0xff]  ;;  %v305_v23 = vrot.slane %v588_v16, 1  ;;  %v306_v24 = vrot.slane %v589_v17, 1  ;;  %v582_v25 = vld [vmem:[%s817_s1 + $0x30] sm:$0xff] }
   0x7   :  { %643 = vmatpush3.msra.mxu0 %v573_v4  ;;  %644 = vmatprep.mubr.msk.f32.mxu0 %vm30_vm2, %v27_v12  ;;  %v308_v26 = vrot.slane %v590_v20, 1  ;;  %v203_v27 = vsel %vm200_vm3, %v201_v18, %v202_v19  ;;  %v205_v28 = vsel %vm200_vm3, %v202_v19, %v204_v21  ;;  %v298_v30 = vld [vmem:[%s817_s1 + $0x10] sm:$0x3]  ;;  %v602_v31 = vld [vmem:[%s817_s1 + $0x40] sm:$0x3]  ;;  %v477_v33 = vrot.slane %v588_v16, 2 }
   0x8   :  { %652 = vmatpush3.msra.mxu1 %v729_v5  ;;  %653 = vmatprep.mubr.msk.f32.mxu1 %vm30_vm2, %v11_v6  ;;  %v307_v29 = vsel %vm24_vm1, %v305_v23, %v306_v24  ;;  %v478_v34 = vrot.slane %v589_v17, 2  ;;  %v480_v35 = vrot.slane %v590_v20, 2 }
   0x9   :  { %645 = vmatmul.mubr.msk.f32.vlgmr.msra.gmra.mxu0 %vm30_vm2, %v29_v13  ;;  %654 = vmatmul.mubr.msk.f32.vlgmr.msra.gmra.mxu1 %vm30_vm2, %v12_v7  ;;  %v309_v32 = vsel %vm24_vm1, %v306_v24, %v308_v26 }
   0xa   :  { %656 = vmatprep.subr.msk.mxu0 %vm35_vm0, %v584_v14  ;;  %665 = vmatprep.subr.msk.mxu1 %vm35_vm0, %v593_v15  ;;  %v479_v36 = vsel %vm200_vm3, %v477_v33, %v478_v34  ;;  %v481_v37 = vsel %vm200_vm3, %v478_v34, %v480_v35 }
   0xb   :  { %657 = vmatpush3.msk.msra.mxu0 %vm35_vm0, %v584_v14  ;;  %666 = vmatpush3.msk.msra.mxu1 %vm35_vm0, %v593_v15 }
   0xc   :  { %658 = vmatprep.subr.mxu0 %v583_v22  ;;  %667 = vmatprep.subr.mxu1 %v574_v2 }
   0xd   :  { %659 = vmatpush3.msra.mxu0 %v583_v22  ;;  %668 = vmatpush3.msra.mxu1 %v574_v2 }
   0xe   :  { %660 = vmatprep.subr.mxu0 %v582_v25  ;;  %669 = vmatprep.subr.mxu1 %v573_v4 }
   0xf   :  { %661 = vmatpush3.msra.mxu0 %v582_v25  ;;  %662 = vmatprep.mubr.msk.f32.mxu0 %vm30_vm2, %v203_v27 }
  0x10   :  { %670 = vmatpush3.msra.mxu1 %v573_v4  ;;  %663 = vmatmul.mubr.msk.f32.vlgmr.msra.gmra.mxu0 %vm30_vm2, %v205_v28 }
  0x11   :  { %671 = vmatprep.mubr.msk.f32.mxu1 %vm30_vm2, %v307_v29  ;;  %674 = vmatprep.subr.msk.mxu0 %vm35_vm0, %v298_v30 }
  0x12   :  { %683 = vmatprep.subr.msk.mxu1 %vm35_vm0, %v602_v31  ;;  %672 = vmatmul.mubr.msk.f32.vlgmr.msra.gmra.mxu1 %vm30_vm2, %v309_v32 }
  0x13   :  { %675 = vmatpush3.msk.msra.mxu0 %vm35_vm0, %v298_v30  ;;  %684 = vmatpush3.msk.msra.mxu1 %vm35_vm0, %v602_v31 }
  0x14   :  { %676 = vmatprep.subr.mxu0 %v721_v3  ;;  %685 = vmatprep.subr.mxu1 %v583_v22 }
  0x15   :  { %677 = vmatpush3.msra.mxu0 %v721_v3  ;;  %686 = vmatpush3.msra.mxu1 %v583_v22 }
  0x16   :  { %678 = vmatprep.subr.mxu0 %v729_v5  ;;  %687 = vmatprep.subr.mxu1 %v582_v25 }
  0x17   :  { %679 = vmatpush3.msra.mxu0 %v729_v5  ;;  %680 = vmatprep.mubr.msk.f32.mxu0 %vm30_vm2, %v588_v16 }
  0x18   :  { %688 = vmatpush3.msra.mxu1 %v582_v25  ;;  %689 = vmatprep.mubr.msk.f32.mxu1 %vm30_vm2, %v479_v36 }
  0x19   :  { %681 = vmatmul.mubr.msk.f32.vlgmr.msra.gmra.mxu0 %vm30_vm2, %v589_v17  ;;  %690 = vmatmul.mubr.msk.f32.vlgmr.msra.gmra.mxu1 %vm30_vm2, %v481_v37 }
  0xc9   :  { %v646_v38 = vpop.f32.mrf.mxu0  ;;  %v655_v39 = vpop.f32.mrf.mxu1 }
  0xca   :  { %v193_v42 = vadd.f32 %v655_v39, %v646_v38 }
  0xcb   :  { %v105_v40 = vpop.f32.mrf.mxu0  ;;  %v187_v41 = vpop.f32.mrf.mxu1 }
  0xcc   :  { %v188_v44 = vadd.f32 %v187_v41, %v105_v40 }
  0xd0   :  { %v664_v43 = vpop.f32.mrf.mxu0 }
  0xd1   :  { %v289_v45 = vadd.f32 %v664_v43, %v193_v42 }
  0xd2   :  { %v673_v46 = vpop.f32.mrf.mxu1  ;;  %v279_v47 = vpop.f32.mrf.mxu0 }
  0xd3   :  { %291 = vst [vmem:[%s819_s2 + $0x8] sm:$0xff] %v289_v45  ;;  %v288_v48 = vadd.f32 %v279_v47, %v188_v44 }
  0xd4   :  { %v383_v49 = vpop.f32.mrf.mxu1 }
  0xd5   :  { %290 = vst [vmem:[%s819_s2] sm:$0xff] %v288_v48 }
  0xd9   :  { %v682_v50 = vpop.f32.mrf.mxu0  ;;  %v691_v51 = vpop.f32.mrf.mxu1 }
  0xda   :  { %v471_v52 = vadd.f32 %v682_v50, %v673_v46 }
  0xdb   :  { %v465_v53 = vpop.f32.mrf.mxu0  ;;  %v555_v56 = vpop.f32.mrf.mxu1 }
  0xdc   :  { %v565_v54 = vadd.f32 %v691_v51, %v471_v52  ;;  %v466_v55 = vadd.f32 %v465_v53, %v383_v49 }
  0xde   :  { %607 = vst [vmem:[%s819_s2 + $0x18] sm:$0xff] %v565_v54  ;;  %v564_v57 = vadd.f32 %v555_v56, %v466_v55 }
  0xe0   :  { %606 = vst [vmem:[%s819_s2 + $0x10] sm:$0xff] %v564_v57 }

</bundles_post_ra>
